<compile_context>
chip_gen: v5e
topology: v5e:2x2
jax: 0.10.0
libtpu: 0.0.40
codegen_flags: <defaults>
</compile_context>

<pallas_src>
import functools

import jax
import jax.numpy as jnp
from jax.experimental import pallas as pl
from jax.experimental.pallas import tpu as pltpu


def _round_up(x, m):
    return ((x + m - 1) // m) * m


def _largest_divisor_leq(k, cap):
    """Largest divisor of k that is <= cap (both in units of 128-col blocks)."""
    cap = max(1, min(cap, k))
    for d in range(cap, 0, -1):
        if k % d == 0:
            return d
    return 1


def _vmem_capacity_bytes():
    """Generation-aware VMEM capacity; conservative 64 MiB (v7x) fallback."""
    try:
        cap = getattr(pltpu.get_tpu_info(), "vmem_capacity_bytes", None)
        if cap:
            return int(cap)
    except Exception:
        pass
    return 64 * 1024 * 1024


def _residual_kernel(*refs, fn):
    """out_tile = fn(x_tile, *arg_tiles) + x_tile, all resident in VMEM."""
    x_ref, *arg_refs, o_ref = refs
    x = x_ref[...]                                   # (rows, tile_cols)
    y = fn(x, *(r[...] for r in arg_refs))           # f32 accumulate inside fn
    o_ref[...] = (y + x.astype(y.dtype)).astype(o_ref.dtype)


class Residual:
    """Pallas port of `Residual(fn)`: forward(x, *args) = fn(x, *args) + x.

    `fn` must be a tile-local traceable function mapping a channel-major
    (rows, cols) tile — rows = images_per_block * C channel rows, cols = a
    lane-aligned chunk of H*W — plus the extra args (passed as whole,
    loop-invariant VMEM blocks) to a tile of the same shape.  fn is traced
    inside the Pallas kernel so its compute and the residual add stay fused
    in VMEM (single HBM read of x, single HBM write of out).
    """

    def __init__(self, fn):
        self.fn = fn

    def __call__(self, x_nchw, *fn_args, images_per_block=1):
        N, C, H, W = x_nchw.shape
        hw = H * W
        R = N * C
        itemsize = jnp.dtype(x_nchw.dtype).itemsize

        # --- row (sublane) tiling -----------------------------------------
        if N % images_per_block != 0:
            raise ValueError("images_per_block must divide the batch size")
        rows = images_per_block * C
        if rows % 8 != 0 and rows != R:
            raise ValueError(
                f"row block {rows} is neither a multiple of 8 nor the full row "
                f"extent {R}; pick images_per_block so images_per_block*C is a "
                f"multiple of 8 (sublane density + Mosaic (8,128) constraint)")

        # --- flatten NCHW -> (N*C, H*W): contiguous reshape, no HBM pass ---
        x2 = x_nchw.reshape(R, hw)

        # --- generation-aware VMEM budget (bytes, not columns) -------------
        vmem_cap = _vmem_capacity_bytes()
        fn_args_bytes = sum(int(a.size) * jnp.dtype(a.dtype).itemsize
                            for a in fn_args)
        # Per-column VMEM cost of one tile column:
        #   x tile    : 2 (double-buffer) * rows * itemsize
        #   out tile  : 2 (double-buffer) * rows * itemsize
        #   f32 temps : ~2 * rows * 4   (fn accumulator + activation temp)
        per_col = rows * (4 * itemsize + 8)
        budget = int(0.55 * vmem_cap) - 2 * fn_args_bytes - (2 << 20)
        cap_cols = max(128, (budget // per_col) // 128 * 128)

        # --- column (lane) tiling: divisor of the (<=128-aligned) extent ---
        pad_cols = 0
        if hw % 128 == 0:
            tile_cols = 128 * _largest_divisor_leq(hw // 128, cap_cols // 128)
        elif hw <= cap_cols:
            tile_cols = hw          # single full-extent column block, no pad
        else:
            # Minimal pad to 128 (one extra HBM pass) only for large,
            # unaligned spatial extents — never pad up to tile_cols.
            pad_cols = _round_up(hw, 128) - hw
            x2 = jnp.pad(x2, ((0, 0), (0, pad_cols)))
            tile_cols = 128 * _largest_divisor_leq((hw + pad_cols) // 128,
                                                   cap_cols // 128)
        hw_p = hw + pad_cols

        # --- VMEM limit for the compiler: computed need + headroom ---------
        need = (4 * rows * tile_cols * itemsize        # in + out, double-buffered
                + 2 * rows * tile_cols * 4             # f32 intermediates
                + 2 * fn_args_bytes)
        vmem_limit = int(min(max(need + (4 << 20), 32 << 20),
                             vmem_cap - (4 << 20)))

        kernel = functools.partial(_residual_kernel, fn=self.fn)
        arg_specs = [
            pl.BlockSpec(a.shape, (lambda *_, nd=a.ndim: (0,) * nd))
            for a in fn_args                           # whole, loop-invariant
        ]
        # NOTE: at real DDPM sizes, sweep pipeline_mode=pl.Buffered(3) on the
        # x/out specs if xprof shows exposed per-step DMA waits.
        out2 = pl.pallas_call(
            kernel,
            out_shape=jax.ShapeDtypeStruct((R, hw_p), x2.dtype),
            grid_spec=pltpu.PrefetchScalarGridSpec(
                num_scalar_prefetch=0,
                grid=(R // rows, hw_p // tile_cols),
                in_specs=[pl.BlockSpec((rows, tile_cols), lambda i, j: (i, j))]
                         + arg_specs,
                out_specs=pl.BlockSpec((rows, tile_cols), lambda i, j: (i, j)),
            ),
            compiler_params=pltpu.CompilerParams(
                dimension_semantics=("parallel", "parallel"),
                vmem_limit_bytes=vmem_limit,
            ),
        )(x2, *fn_args)

        if pad_cols:
            out2 = out2[:, :hw]
        return out2.reshape(N, C, H, W)
        # TODO(synk): input_output_aliases={0: 0} skipped — inputs are not
        # donated in this eager demo, so aliasing would force an extra copy.
        # TODO(synk): bf16 I/O (keeping f32 accumulation in-kernel) would
        # roughly halve HBM traffic on this bandwidth-bound op, but changes
        # numerics vs the f32 PyTorch reference, so it is left to the caller.


def mix_silu(x_tile, w_big, b_big):
    """Demo wrapped fn: 1x1 conv (channel mix) + SiLU on a channel-major tile.

    `w_big` is a block-diagonal (rows, rows) weight = kron(I_images, w.T)
    built once at trace time outside the kernel, so the folded-batch rows
    stay sublane-dense and the mix is a single small MXU dot (its slack is
    irrelevant: the kernel is HBM-bandwidth bound).  For large C, pass a
    plain (C, C) weight per image block and cast operands to bf16.
    """
    y = jnp.dot(w_big, x_tile, preferred_element_type=jnp.float32)
    return jax.nn.silu(y + b_big)


if __name__ == "__main__":
    key = jax.random.PRNGKey(0)
    kx, kw, kb = jax.random.split(key, 3)

    N, C, H, W = 2, 4, 16, 16
    x = jax.random.normal(kx, (N, C, H, W), dtype=jnp.float32)
    w = jax.random.normal(kw, (C, C), dtype=jnp.float32) * 0.1
    b = jax.random.normal(kb, (C,), dtype=jnp.float32) * 0.1

    # Fold both images into one row block (8 dense sublanes for C=4) and build
    # the matching block-diagonal channel-mix weight once at trace time.
    images_per_block = 2
    w_big = jnp.kron(jnp.eye(images_per_block, dtype=w.dtype), w.T)   # (8, 8)
    b_big = jnp.tile(b, images_per_block).reshape(-1, 1)              # (8, 1)

    residual = Residual(mix_silu)
    out = residual(x, w_big, b_big, images_per_block=images_per_block)
    out = jax.block_until_ready(out)

    # Pure-JAX reference: fn(x) + x with the same 1x1-conv semantics
    # (y[n,o,l] = sum_i w[i,o] * x[n,i,l]).
    x_flat = x.reshape(N, C, H * W)
    y = jnp.einsum("io,nil->nol", w, x_flat) + b.reshape(1, C, 1)
    ref = (jax.nn.silu(y) + x_flat).reshape(N, C, H, W)

    assert out.shape == x.shape and out.dtype == x.dtype
    assert jnp.allclose(out, ref, atol=1e-5, rtol=1e-5)

    print("KERNEL_OK")
</pallas_src>

<mosaic_0001>
module attributes {stable_mosaic.version = 11 : i64} {
  func.func @_residual_kernel(%arg0: i32, %arg1: i32, %arg2: memref<8x256xf32, #tpu.memory_space<vmem>>, %arg3: memref<8x8xf32, #tpu.memory_space<vmem>>, %arg4: memref<8x1xf32, #tpu.memory_space<vmem>>, %arg5: memref<8x256xf32, #tpu.memory_space<vmem>>) attributes {dimension_semantics = [#tpu.dimension_semantics<parallel>, #tpu.dimension_semantics<parallel>], iteration_bounds = array<i64: 1, 1>, scalar_prefetch = 0 : i64, scratch_operands = 0 : i64, tpu.core_type = #tpu.core_type<tc>, window_params = [{transform_indices = @transform_0, window_bounds = array<i64: 8, 256>}, {pipeline_mode = #tpu.pipeline_mode<synchronous>, transform_indices = @transform_1, window_bounds = array<i64: 8, 8>}, {pipeline_mode = #tpu.pipeline_mode<synchronous>, transform_indices = @transform_2, window_bounds = array<i64: 8, 1>}, {transform_indices = @transform_3, window_bounds = array<i64: 8, 256>}]} {
    %c0 = arith.constant 0 : index
    %c0_0 = arith.constant 0 : index
    %0 = vector.load %arg2[%c0, %c0_0] : memref<8x256xf32, #tpu.memory_space<vmem>>, vector<8x256xf32>
    %c0_1 = arith.constant 0 : index
    %c0_2 = arith.constant 0 : index
    %1 = vector.load %arg3[%c0_1, %c0_2] : memref<8x8xf32, #tpu.memory_space<vmem>>, vector<8x8xf32>
    %c0_3 = arith.constant 0 : index
    %c0_4 = arith.constant 0 : index
    %2 = vector.load %arg4[%c0_3, %c0_4] : memref<8x1xf32, #tpu.memory_space<vmem>>, vector<8x1xf32>
    %cst = arith.constant dense<0.000000e+00> : vector<8x256xf32>
    %3 = tpu.matmul %1, %0, %cst {dimension_numbers = #tpu.dot_dimension_numbers<[1], [0], [0], [1], [0, 0, 1, 1], [], []>} : vector<8x8xf32>, vector<8x256xf32>, vector<8x256xf32> -> vector<8x256xf32>
    %4 = vector.broadcast %2 : vector<8x1xf32> to vector<8x256xf32>
    %5 = arith.addf %3, %4 : vector<8x256xf32>
    %6 = arith.negf %5 : vector<8x256xf32>
    %7 = math.exp %6 : vector<8x256xf32>
    %cst_5 = arith.constant 1.000000e+00 : f32
    %8 = vector.broadcast %cst_5 : f32 to vector<8x256xf32>
    %9 = arith.addf %8, %7 : vector<8x256xf32>
    %10 = arith.divf %8, %9 : vector<8x256xf32>
    %11 = arith.mulf %5, %10 : vector<8x256xf32>
    %12 = arith.addf %11, %0 : vector<8x256xf32>
    %c0_6 = arith.constant 0 : index
    %c0_7 = arith.constant 0 : index
    %13 = vector.load %arg5[%c0_6, %c0_7] : memref<8x256xf32, #tpu.memory_space<vmem>>, vector<8x256xf32>
    tpu.vector_store %arg5[%c0_6, %c0_7], %12 {strides = array<i32>} : memref<8x256xf32, #tpu.memory_space<vmem>>, vector<8x256xf32>,
    return
  }
  func.func @transform_0(%arg0: i32, %arg1: i32) -> (i32, i32) {
    %c0_i32 = arith.constant 0 : i32
    return %arg0, %arg1 : i32, i32
  }
  func.func @transform_1(%arg0: i32, %arg1: i32) -> (i32, i32) {
    %c0_i32 = arith.constant 0 : i32
    %c0_i32_0 = arith.constant 0 : i32
    %c0_i32_1 = arith.constant 0 : i32
    return %c0_i32, %c0_i32_0 : i32, i32
  }
  func.func @transform_2(%arg0: i32, %arg1: i32) -> (i32, i32) {
    %c0_i32 = arith.constant 0 : i32
    %c0_i32_0 = arith.constant 0 : i32
    %c0_i32_1 = arith.constant 0 : i32
    return %c0_i32, %c0_i32_0 : i32, i32
  }
  func.func @transform_3(%arg0: i32, %arg1: i32) -> (i32, i32) {
    %c0_i32 = arith.constant 0 : i32
    return %arg0, %arg1 : i32, i32
  }
}

</mosaic_0001>

<bundles_post_ra>
// kernel: tpu_custom_call.1
= control target key start
LH: loop header
LB: loop body
LE: loop exit
PB: predicated region body
PF: predicated region fallthrough
CT: control target
= control target key end

     0   :  { %8 = vsyncpa [#allocation3], 0  ;;  %s246_s0 = inlined_call_operand.hbm [shape: f32[8,256], index: 0, kind: input, shape index: {}]   ;;  %s247_s1 = inlined_call_operand.vmem [shape: f32[8,8], index: 1, kind: input, shape index: {}]   ;;  %s248_s2 = inlined_call_operand.vmem [shape: f32[8,1], index: 2, kind: input, shape index: {}]   ;;  %s249_s3 = inlined_call_operand.hbm [shape: f32[8,256], index: 3, kind: output, shape index: {}]  }
   0x1   :  { %9 = vsyncpa [#allocation4], 0  ;;  %s15_s14 = sshll.u32 %s246_s0, 4  ;;  %s211_s15 = smov [#allocation2]   ;;  %s16_s14 = int_to_ptr.hbm [resolvable:$true] %s15_s14 }
   0x2   :  { %s17_s16 = sshll.u32 %s211_s15, 4  ;;  %s18_s16 = int_to_ptr.vmem [resolvable:$true] %s17_s16 }
   0x3   :  { %20 = dma.hbm_to_vmem [thread:$0]  %s16_s14, 256, %s18_s16, [#allocation3]  }
   0x4   :  { %207 = dma.done.wait [#allocation3], 256  }
   0x5   :  { %208 = vsyncadd [#allocation3], 4294967040  ;;  %v212_v0 = vmov 0   ;;  %vm38_vm0 = vcmask 64512   ;;  %v29_v1 = vld [vmem:[#allocation2] sm:$0xff]  ;;  %v30_v2 = vld [vmem:[#allocation2 + $0x8] sm:$0xff] }
   0x6   :  { %150 = vset.pattern.permute.xlu0 %v212_v0  ;;  %v31_v3 = vld [vmem:[%s247_s1] sm:$0xff]  ;;  %57 = vmatpush.msra.mxu0 %v29_v1  ;;  %s213_s1 = smov [#allocation5]   ;;  %s133_s22 = sshll.u32 %s249_s3, 4  ;;  %s134_s22 = int_to_ptr.hbm [resolvable:$true] %s133_s22 }
   0x7   :  { %77 = vmatpush.msra.mxu1 %v30_v2  ;;  %v32_v4 = vld [vmem:[%s248_s2] sm:$0xff]  ;;  %143 = vmatmul.msk.f32.vlgmr.msra.gmra.mxu0 %vm38_vm0, %v31_v3  ;;  %s131_s2 = sshll.u32 %s213_s1, 4  ;;  %s132_s2 = int_to_ptr.vmem [resolvable:$true] %s131_s2 }
   0x8   :  { %144 = vmatmul.msk.f32.vlgmr.msra.gmra.mxu1 %vm38_vm0, %v31_v3  ;;  %35 = vperm.xlu0 %150, %v32_v4  }
  0x7a   :  { %v36_v5 = vpop.permute.xlu0 %35 }
  0x84   :  { %v59_v6 = vpop.f32.mrf.mxu0 }
  0x85   :  { %v79_v7 = vpop.f32.mrf.mxu1  ;;  %v60_v8 = vadd.f32 %v59_v6, %v36_v5 }
  0x86   :  { %v80_v9 = vadd.f32 %v79_v7, %v36_v5 }
  0x87   :  { %v145_v10 = vmul.f32 -1.442695, %v60_v8 }
  0x88   :  { %v146_v11 = vmul.f32 -1.442695, %v80_v9 }
  0x89   :  { %151 = vpow2.f32 %v145_v10 }
  0x8a   :  { %153 = vpow2.f32 %v146_v11 }
  0x8f   :  { %v152_v12 = vpop.eup %151 }
  0x90   :  { %v154_v13 = vpop.eup %153  ;;  %v88_v14 = vadd.f32 1.0, %v152_v12 }
  0x91   :  { %v89_v15 = vadd.f32 1.0, %v154_v13 }
  0x92   :  { %155 = vrcp.f32 %v88_v14  ;;  %v101_v21 = vand.u32 2147483648, %v88_v14  ;;  %v99_v24 = vand.u32 2147483647, %v88_v14  ;;  %vm95_vm3 = vweird.f32 %v88_v14 }
  0x93   :  { %157 = vrcp.f32 %v89_v15  ;;  %v116_v25 = vand.u32 2147483648, %v89_v15  ;;  %v114_v27 = vand.u32 2147483647, %v89_v15  ;;  %vm110_vm5 = vweird.f32 %v89_v15 }
  0x94   :  { %v102_v29 = vor.u32 1.1754944e-38, %v101_v21  ;;  %vm100_vm6 = vcmp.eq.f32.partialorder %v99_v24, 8.507059e+37 }
  0x95   :  { %v117_v32 = vor.u32 1.1754944e-38, %v116_v25  ;;  %vm115_vm8 = vcmp.eq.f32.partialorder %v114_v27, 8.507059e+37 }
  0x98   :  { %v156_v16 = vpop.eup %155 }
  0x99   :  { %v158_v17 = vpop.eup %157  ;;  %v91_v18 = vmul.f32 %v156_v16, %v88_v14  ;;  %vm96_vm1 = vweird.f32 %v156_v16 }
  0x9a   :  { %v106_v19 = vmul.f32 %v158_v17, %v89_v15  ;;  %vm111_vm2 = vweird.f32 %v158_v17  ;;  %vm97_vm4 = vmor %vm95_vm3, %vm96_vm1 }
  0x9b   :  { %v92_v20 = vsub.f32 1.0, %v91_v18  ;;  %vm112_vm7 = vmor %vm110_vm5, %vm111_vm2 }
  0x9c   :  { %v107_v22 = vsub.f32 1.0, %v106_v19 }
  0x9d   :  { %v93_v23 = vmul.f32 %v156_v16, %v92_v20 }
  0x9e   :  { %v108_v26 = vmul.f32 %v158_v17, %v107_v22 }
  0x9f   :  { %v94_v28 = vadd.f32 %v156_v16, %v93_v23 }
  0xa0   :  { %v109_v30 = vadd.f32 %v158_v17, %v108_v26 }
  0xa1   :  { %v98_v31 = vsel %vm97_vm4, %v156_v16, %v94_v28 }
  0xa2   :  { %v103_v33 = vsel %vm100_vm6, %v102_v29, %v98_v31  ;;  %v113_v34 = vsel %vm112_vm7, %v158_v17, %v109_v30 }
  0xa3   :  { %v120_v35 = vmul.f32 %v103_v33, %v60_v8  ;;  %v118_v36 = vsel %vm115_vm8, %v117_v32, %v113_v34 }
  0xa4   :  { %v121_v37 = vmul.f32 %v118_v36, %v80_v9 }
  0xa5   :  { %v122_v38 = vadd.f32 %v120_v35, %v29_v1 }
  0xa6   :  { %v123_v39 = vadd.f32 %v121_v37, %v30_v2 }
  0xa7   :  { %124 = vst [vmem:[#allocation5] sm:$0xff] %v122_v38 }
  0xa8   :  { %125 = vst [vmem:[#allocation5 + $0x8] sm:$0xff] %v123_v39 }
  0xa9   :  { %136 = dma.vmem_to_hbm [thread:$0]  %s132_s2, 256, %s134_s22, [#allocation4]  }
  0xaa   :  { %209 = dma.done.wait [#allocation4], 256  }
  0xab   :  { %210 = vsyncadd [#allocation4], 4294967040 }
  0xac   :  { %141 = vsyncpa [#allocation3], 1 }
  0xad   :  { %142 = vsyncpa [#allocation4], 1 }

</bundles_post_ra>
